<compile_context>
chip_gen: v7x
topology: tpu7x:2x2x1
jax: 0.10.0
libtpu: 0.0.40
codegen_flags: <defaults>
</compile_context>

<pallas_src>
import jax
import jax.numpy as jnp
from jax.experimental import pallas as pl
from jax.experimental.pallas import tpu as pltpu

_BN_EPS = 1e-5   # nn.BatchNorm2d default
_LANE = 128


def _vmem_capacity_bytes(default=64 << 20):
    """Best-effort query of per-core VMEM capacity; conservative fallback."""
    try:
        info = pltpu.get_tpu_info()
        for attr in ("vmem_capacity_bytes", "vmem_size_bytes", "vmem_bytes"):
            v = getattr(info, attr, None)
            if v:
                return int(v)
    except Exception:
        pass
    return default


def _pick_tile_n(n, batch, cin, cout, x_bytes, out_bytes, vmem_bytes):
    """Largest lane-dense spatial tile fitting a conservative VMEM budget."""
    n_ceil = pl.cdiv(n, _LANE) * _LANE                  # max useful tile
    per_elem = 2 * (cin * x_bytes + cout * out_bytes)   # double-buffered in+out bytes/element
    budget = max(vmem_bytes // 4, 4 << 20)               # headroom for params / compiler scratch
    tn = max(_LANE, (budget // per_elem) // _LANE * _LANE)
    tn = min(tn, n_ceil)
    # v7x megacore: keep at least 2 parallel grid steps when possible.
    if batch * pl.cdiv(n, tn) < 2 and n > _LANE:
        half = pl.cdiv(pl.cdiv(n, 2), _LANE) * _LANE
        tn = max(_LANE, min(tn, half))
    return tn


def _make_kernel(cin, use_mxu):
    """Fused (folded 1x1 conv) + sigmoid kernel body."""

    def kernel(x_ref, w_ref, b_ref, o_ref):
        # x_ref: (1, Cin, TN)  spatial-lane-dense input tile
        # w_ref: (Cout, Cin)   folded effective weight (resident)
        # b_ref: (Cout, 1)     folded effective bias   (resident)
        b = b_ref[...].astype(jnp.float32)                       # (Cout, 1)
        if use_mxu:
            z = jnp.dot(w_ref[...], x_ref[0],
                        preferred_element_type=jnp.float32) + b   # (Cout, TN)
        else:
            # Tiny contraction: unrolled VPU FMA chain, keep it off the MXU.
            x = x_ref[0].astype(jnp.float32)                      # (Cin, TN)
            w = w_ref[...].astype(jnp.float32)                    # (Cout, Cin)
            z = b
            for ci in range(cin):
                z = z + w[:, ci:ci + 1] * x[ci:ci + 1, :]         # (Cout, TN)
        # Sigmoid (EUP) and lane-dense store.
        o_ref[0] = jax.nn.sigmoid(z).astype(o_ref.dtype)

    return kernel


def depth_out_conv(x, params, *, tile_n=None):
    """DepthOutConv forward (BatchNorm in inference mode).

    x      : (B, Cin, H, W)   NCHW, like the PyTorch module.
    params : (w_dw, b_dw, w_pw, b_pw, gamma, beta, run_mean, run_var)
             w_dw/b_dw: (Cin,)  w_pw: (Cout, Cin)  others: (Cout,)
    returns: (B, Cout, H, W)
    """
    w_dw, b_dw, w_pw, b_pw, gamma, beta, run_mean, run_var = params
    B, Cin, H, W = x.shape
    Cout = w_pw.shape[0]
    N = H * W

    # ---- constant-fold depthwise + pointwise bias + BatchNorm into (W_eff, b_eff)
    f32 = jnp.float32
    scale = gamma.astype(f32) / jnp.sqrt(run_var.astype(f32) + _BN_EPS)       # (Cout,)
    w_eff = scale[:, None] * w_pw.astype(f32) * w_dw.astype(f32)[None, :]     # (Cout, Cin)
    b_eff = scale * (w_pw.astype(f32) @ b_dw.astype(f32)
                     + b_pw.astype(f32) - run_mean.astype(f32)) + beta.astype(f32)
    b_eff = b_eff.reshape(Cout, 1)                                            # (Cout, 1)

    use_mxu = (Cin * Cout) >= 256
    if use_mxu and x.dtype == jnp.bfloat16:
        w_eff = w_eff.astype(jnp.bfloat16)   # bf16 MXU fast path, f32 accumulation

    xf = x.reshape(B, Cin, N)                # free reshape: NCHW is C-major

    # ---- spatial tile size from a per-generation VMEM budget (no pad/slice).
    x_bytes = x.dtype.itemsize
    out_bytes = x.dtype.itemsize
    vmem_bytes = _vmem_capacity_bytes()
    if tile_n is None:
        tn = _pick_tile_n(N, B, Cin, Cout, x_bytes, out_bytes, vmem_bytes)
    else:
        tn = min(max(_LANE, tile_n // _LANE * _LANE), pl.cdiv(N, _LANE) * _LANE)
    n_tiles = pl.cdiv(N, tn)                 # last block may be ragged (masked)

    footprint = 2 * tn * (Cin * x_bytes + Cout * out_bytes)  # double-buffered tiles
    vmem_limit = int(min(vmem_bytes, max(footprint + (8 << 20), 32 << 20)))

    kernel = _make_kernel(Cin, use_mxu)

    out = pl.pallas_call(
        kernel,
        out_shape=jax.ShapeDtypeStruct((B, Cout, N), x.dtype),
        grid_spec=pltpu.PrefetchScalarGridSpec(
            num_scalar_prefetch=0,
            grid=(B, n_tiles),
            in_specs=[
                pl.BlockSpec((1, Cin, tn), lambda b, t: (b, 0, t)),   # x tile
                pl.BlockSpec((Cout, Cin), lambda b, t: (0, 0)),       # W_eff (resident)
                pl.BlockSpec((Cout, 1), lambda b, t: (0, 0)),         # b_eff (resident)
            ],
            out_specs=pl.BlockSpec((1, Cout, tn), lambda b, t: (b, 0, t)),
        ),
        compiler_params=pltpu.CompilerParams(
            dimension_semantics=("parallel", "parallel"),
            vmem_limit_bytes=vmem_limit),
    )(xf, w_eff, b_eff)

    return out.reshape(B, Cout, H, W)


def _reference(x, params, eps=_BN_EPS):
    """Pure-JAX reference mirroring the PyTorch forward (BN in eval mode)."""
    w_dw, b_dw, w_pw, b_pw, gamma, beta, run_mean, run_var = params
    col = lambda v: v.reshape(1, -1, 1, 1)
    y = x * col(w_dw) + col(b_dw)                               # depthwise 1x1
    z = jnp.einsum("bchw,oc->bohw", y, w_pw) + col(b_pw)        # pointwise 1x1
    z = (z - col(run_mean)) * (col(gamma) / jnp.sqrt(col(run_var) + eps)) + col(beta)
    return jax.nn.sigmoid(z)


def make_params(key, in_channels, out_channels, dtype=jnp.float32):
    """Deterministic synthetic parameters for DepthOutConv."""
    ks = jax.random.split(key, 8)
    s = 0.5
    w_dw = s * jax.random.normal(ks[0], (in_channels,), dtype)
    b_dw = s * jax.random.normal(ks[1], (in_channels,), dtype)
    w_pw = s * jax.random.normal(ks[2], (out_channels, in_channels), dtype)
    b_pw = s * jax.random.normal(ks[3], (out_channels,), dtype)
    gamma = 1.0 + 0.1 * jax.random.normal(ks[4], (out_channels,), dtype)
    beta = 0.1 * jax.random.normal(ks[5], (out_channels,), dtype)
    run_mean = 0.1 * jax.random.normal(ks[6], (out_channels,), dtype)
    run_var = jax.random.uniform(ks[7], (out_channels,), dtype,
                                 minval=0.5, maxval=1.5)
    return (w_dw, b_dw, w_pw, b_pw, gamma, beta, run_mean, run_var)


if __name__ == "__main__":
    root = jax.random.PRNGKey(0)
    k1, k2, k3, k4, k5, k6 = jax.random.split(root, 6)

    # --- primary small test: tiny channels -> folded VPU path ----------------
    B, Cin, Cout, H, W = 2, 4, 4, 16, 16
    x = jax.random.normal(k1, (B, Cin, H, W), jnp.float32)
    params = make_params(k2, Cin, Cout)
    out = jax.block_until_ready(depth_out_conv(x, params))
    ref = jax.block_until_ready(_reference(x, params))
    assert out.shape == (B, Cout, H, W)
    assert jnp.allclose(out, ref, atol=2e-5, rtol=1e-5), "mismatch (VPU path)"

    # --- ragged spatial block (H*W not a multiple of 128), larger Cin --------
    B2, Cin2, Cout2, H2, W2 = 2, 32, 4, 20, 20
    x2 = jax.random.normal(k3, (B2, Cin2, H2, W2), jnp.float32)
    params2 = make_params(k4, Cin2, Cout2)
    out2 = jax.block_until_ready(depth_out_conv(x2, params2))
    ref2 = jax.block_until_ready(_reference(x2, params2))
    assert out2.shape == (B2, Cout2, H2, W2)
    assert jnp.allclose(out2, ref2, atol=2e-5, rtol=1e-5), "mismatch (ragged block)"

    # --- MXU path: Cin*Cout >= 256 -------------------------------------------
    B3, Cin3, Cout3, H3, W3 = 2, 64, 8, 16, 16
    x3 = jax.random.normal(k5, (B3, Cin3, H3, W3), jnp.float32)
    params3 = make_params(k6, Cin3, Cout3)
    out3 = jax.block_until_ready(depth_out_conv(x3, params3))
    ref3 = jax.block_until_ready(_reference(x3, params3))
    assert out3.shape == (B3, Cout3, H3, W3)
    assert jnp.allclose(out3, ref3, atol=2e-5, rtol=1e-5), "mismatch (MXU path)"

    print("KERNEL_OK")
</pallas_src>

<mosaic_0001>
module attributes {stable_mosaic.version = 11 : i64} {
  func.func @kernel(%arg0: i32, %arg1: i32, %arg2: memref<1x4x256xf32, #tpu.memory_space<vmem>>, %arg3: memref<4x4xf32, #tpu.memory_space<vmem>>, %arg4: memref<4x1xf32, #tpu.memory_space<vmem>>, %arg5: memref<1x4x256xf32, #tpu.memory_space<vmem>>) attributes {dimension_semantics = [#tpu.dimension_semantics<parallel>, #tpu.dimension_semantics<parallel>], iteration_bounds = array<i64: 2, 1>, scalar_prefetch = 0 : i64, scratch_operands = 0 : i64, tpu.core_type = #tpu.core_type<tc>, window_params = [{transform_indices = @transform_0, window_bounds = array<i64: 1, 4, 256>}, {pipeline_mode = #tpu.pipeline_mode<synchronous>, transform_indices = @transform_1, window_bounds = array<i64: 4, 4>}, {pipeline_mode = #tpu.pipeline_mode<synchronous>, transform_indices = @transform_2, window_bounds = array<i64: 4, 1>}, {transform_indices = @transform_3, window_bounds = array<i64: 1, 4, 256>}]} {
    %c0 = arith.constant 0 : index
    %c0_0 = arith.constant 0 : index
    %0 = vector.load %arg4[%c0, %c0_0] : memref<4x1xf32, #tpu.memory_space<vmem>>, vector<4x1xf32>
    %c0_1 = arith.constant 0 : index
    %c0_2 = arith.constant 0 : index
    %c0_3 = arith.constant 0 : index
    %1 = vector.load %arg2[%c0_1, %c0_2, %c0_3] : memref<1x4x256xf32, #tpu.memory_space<vmem>>, vector<1x4x256xf32>
    %2 = vector.shape_cast %1 : vector<1x4x256xf32> to vector<4x256xf32>
    %c0_4 = arith.constant 0 : index
    %c0_5 = arith.constant 0 : index
    %3 = vector.load %arg3[%c0_4, %c0_5] : memref<4x4xf32, #tpu.memory_space<vmem>>, vector<4x4xf32>
    %4 = vector.extract_strided_slice %3 {offsets = [0, 0], sizes = [4, 1], strides = [1, 1]} : vector<4x4xf32> to vector<4x1xf32>
    %5 = vector.extract_strided_slice %2 {offsets = [0, 0], sizes = [1, 256], strides = [1, 1]} : vector<4x256xf32> to vector<1x256xf32>
    %6 = vector.broadcast %4 : vector<4x1xf32> to vector<4x256xf32>
    %7 = vector.broadcast %5 : vector<1x256xf32> to vector<4x256xf32>
    %8 = arith.mulf %6, %7 : vector<4x256xf32>
    %9 = vector.broadcast %0 : vector<4x1xf32> to vector<4x256xf32>
    %10 = arith.addf %9, %8 : vector<4x256xf32>
    %11 = vector.extract_strided_slice %3 {offsets = [0, 1], sizes = [4, 1], strides = [1, 1]} : vector<4x4xf32> to vector<4x1xf32>
    %12 = vector.extract_strided_slice %2 {offsets = [1, 0], sizes = [1, 256], strides = [1, 1]} : vector<4x256xf32> to vector<1x256xf32>
    %13 = vector.broadcast %11 : vector<4x1xf32> to vector<4x256xf32>
    %14 = vector.broadcast %12 : vector<1x256xf32> to vector<4x256xf32>
    %15 = arith.mulf %13, %14 : vector<4x256xf32>
    %16 = arith.addf %10, %15 : vector<4x256xf32>
    %17 = vector.extract_strided_slice %3 {offsets = [0, 2], sizes = [4, 1], strides = [1, 1]} : vector<4x4xf32> to vector<4x1xf32>
    %18 = vector.extract_strided_slice %2 {offsets = [2, 0], sizes = [1, 256], strides = [1, 1]} : vector<4x256xf32> to vector<1x256xf32>
    %19 = vector.broadcast %17 : vector<4x1xf32> to vector<4x256xf32>
    %20 = vector.broadcast %18 : vector<1x256xf32> to vector<4x256xf32>
    %21 = arith.mulf %19, %20 : vector<4x256xf32>
    %22 = arith.addf %16, %21 : vector<4x256xf32>
    %23 = vector.extract_strided_slice %3 {offsets = [0, 3], sizes = [4, 1], strides = [1, 1]} : vector<4x4xf32> to vector<4x1xf32>
    %24 = vector.extract_strided_slice %2 {offsets = [3, 0], sizes = [1, 256], strides = [1, 1]} : vector<4x256xf32> to vector<1x256xf32>
    %25 = vector.broadcast %23 : vector<4x1xf32> to vector<4x256xf32>
    %26 = vector.broadcast %24 : vector<1x256xf32> to vector<4x256xf32>
    %27 = arith.mulf %25, %26 : vector<4x256xf32>
    %28 = arith.addf %22, %27 : vector<4x256xf32>
    %29 = arith.negf %28 : vector<4x256xf32>
    %30 = math.exp %29 : vector<4x256xf32>
    %cst = arith.constant 1.000000e+00 : f32
    %31 = vector.broadcast %cst : f32 to vector<4x256xf32>
    %32 = arith.addf %31, %30 : vector<4x256xf32>
    %33 = arith.divf %31, %32 : vector<4x256xf32>
    %c0_6 = arith.constant 0 : index
    %c0_7 = arith.constant 0 : index
    %c0_8 = arith.constant 0 : index
    %34 = vector.load %arg5[%c0_6, %c0_7, %c0_8] : memref<1x4x256xf32, #tpu.memory_space<vmem>>, vector<1x4x256xf32>
    %35 = vector.shape_cast %34 : vector<1x4x256xf32> to vector<4x256xf32>
    %36 = vector.shape_cast %33 : vector<4x256xf32> to vector<1x4x256xf32>
    tpu.vector_store %arg5[%c0_6, %c0_7, %c0_8], %36 {strides = array<i32>} : memref<1x4x256xf32, #tpu.memory_space<vmem>>, vector<1x4x256xf32>,
    return
  }
  func.func @transform_0(%arg0: i32, %arg1: i32) -> (i32, i32, i32) {
    %c0_i32 = arith.constant 0 : i32
    %c0_i32_0 = arith.constant 0 : i32
    return %arg0, %c0_i32, %arg1 : i32, i32, i32
  }
  func.func @transform_1(%arg0: i32, %arg1: i32) -> (i32, i32) {
    %c0_i32 = arith.constant 0 : i32
    %c0_i32_0 = arith.constant 0 : i32
    %c0_i32_1 = arith.constant 0 : i32
    return %c0_i32, %c0_i32_0 : i32, i32
  }
  func.func @transform_2(%arg0: i32, %arg1: i32) -> (i32, i32) {
    %c0_i32 = arith.constant 0 : i32
    %c0_i32_0 = arith.constant 0 : i32
    %c0_i32_1 = arith.constant 0 : i32
    return %c0_i32, %c0_i32_0 : i32, i32
  }
  func.func @transform_3(%arg0: i32, %arg1: i32) -> (i32, i32, i32) {
    %c0_i32 = arith.constant 0 : i32
    %c0_i32_0 = arith.constant 0 : i32
    return %arg0, %c0_i32, %arg1 : i32, i32, i32
  }
}

</mosaic_0001>

<bundles_post_ra>
// kernel: tpu_custom_call.1
= control target key start
LH: loop header
LB: loop body
LE: loop exit
PB: predicated region body
PF: predicated region fallthrough
CT: control target
= control target key end

     0   :  { %8 = vsyncpa [#allocation3], 0  ;;  %s858_s0 = inlined_call_operand.hbm [shape: f32[2,4,256], index: 0, kind: input, shape index: {}]   ;;  %s859_s1 = inlined_call_operand.vmem [shape: f32[4,4], index: 1, kind: input, shape index: {}]   ;;  %s860_s2 = inlined_call_operand.vmem [shape: f32[4,1], index: 2, kind: input, shape index: {}]   ;;  %s861_s3 = inlined_call_operand.hbm [shape: f32[2,4,256], index: 3, kind: output, shape index: {}]  }
   0x1   :  { %10 = vsyncpa [#allocation3 + $0x1], 0 }
   0x2   :  { %11 = vsyncpa [#allocation4], 0 }
   0x3   :  { %13 = vsyncpa [#allocation4 + $0x1], 0  ;;  %s676_s12 = smov 0   ;;  %s678_s13 = smov 0  }
   0x4   :  { %s680_s14 = smov 0   ;;  %s682_s15 = smov 0  }
   0x5   :  { %s684_s16 = smov 0   ;;  %s686_s17 = smov 0  }
   0x6 LB: > { %s439_s18 = sadd.s32 4294967295, %s648_s17   ;;  %s440_s19 = sadd.s32 4294967294, %s648_s17   ;;  %s648_s17 = sphi %s686_s17, %s19_s17   ;;  %s644_s16 = sphi %s684_s16, %s877_s16   ;;  %s640_s15 = sphi %s682_s15, %s876_s15   ;;  %s636_s14 = sphi %s680_s14, %s875_s14   ;;  %s632_s13 = sphi %s678_s13, %s874_s13   ;;  %s628_s12 = sphi %s676_s12, %s873_s12  }
   0x7   : > { %s31_s20 = sadd.s32 1, %s644_s16  ;;  %s40_s21 = sadd.s32 1, %s636_s14 }
   0x8   : > { %p33_p0 = scmp.ge.s32.totalorder %s31_s20, 2  ;;  %p47_p1 = scmp.ne.s32.totalorder %s636_s14, %s632_s13 }
   0x9   : > { %p48_p2 = scmp.eq.s32.totalorder %s648_s17, 0  ;;  %p53_p3 = scmp.ne.s32.totalorder %s632_s13, %s628_s12 }
   0xa   : > { %s879_s20 = smov (%p33_p0, %s31_s20), 0  ;;  %p54_p5 = scmp.eq.s32.totalorder %s439_s18, 0 }
   0xb   : > { %p717_p4 = por %p48_p2, %p47_p1  ;;  %s35_s23 = ssub.s32 %s644_s16, %s879_s20 }
   0xc   : > { %p121_p6 = scmp.eq.s32.totalorder %s439_s18, 1  ;;  %p38_p7 = scmp.eq.s32.totalorder %s35_s23, 0 }
   0xd   : > { %p723_p8 = por %p54_p5, %p53_p3  ;;  %p127_p10 = scmp.eq.s32.totalorder %s440_s19, 1 }
   0xe   : > { %p727_p9 = por %p121_p6, %p47_p1  ;;  %p470_p13 = scmp.lt.s32.totalorder %s648_s17, 2 }
   0xf   : > { %s732_s26 = scalar_select %p38_p7, %s636_s14, %s40_s21  }
  0x10   : > { %s865_s25 = scalar_select %p727_p9, 1, 0 }
  0x11   : > { %p734_p11 = por %p127_p10, %p53_p3  ;;  %s153_s28 = sand.u32 1, %s636_s14  }
  0x12   : > { %s443_s29 = sshll.u32 %s153_s28, 3  ;;  %s456_s30 = sshll.u32 %s644_s16, 7 }
  0x13   : > { %s866_s27 = scalar_select %p734_p11, 1, 0 }
  0x14   : > { %s745_s6 = scalar_lea.hbm %s858_s0, %s456_s30  ;;  %s157_s7 = scalar_lea.vmem [#allocation2], %s443_s29 }
  0x15   : > { %s167_s8 = sshll.u32 %s157_s7, 4  ;;  %p751_p0 = pnand %p470_p13, %p717_p4  ;;  %s747_s8 = int_to_ptr.vmem [resolvable:$true] %s167_s8 }
  0x16   : > { %s154_s10 = scalar_lea.sflag [#allocation3], %s153_s28  ;;  %s536_s11 = scalar_lea.hbm %s745_s6, 128 }
  0x17   : > { %p537_p3 = scmp.ne.s32.totalorder %s745_s6, %s536_s11  ;;  %p538_p5 = pneg %p751_p0 }
  0x18   : > { %s541_s21 = scalar_lea.hbm %s858_s0, 256  ;;  %p542_p4 = scmp.lt.u32.totalorder %s745_s6, %s858_s0 }
  0x19   : > { %p539_p6 = pnand %p538_p5, %p537_p3  ;;  %p543_p10 = scmp.lt.u32.totalorder %s541_s21, %s536_s11 }
  0x1a   : > { %p545_p12 = scmp.lt.u32.totalorder %s536_s11, %s745_s6 }
  0x1b   : > { %p540_p7 = pneg %p539_p6  ;;  %p544_p13 = por %p543_p10, %p542_p4 }
  0x1d   : > { %p546_p1 = por %p545_p12, %p544_p13 }
  0x1f   : > { %p547_p2 = pnand %p546_p1, %p540_p7 }
  0x21   : > { %550 = shalt.err (!%p547_p2)
}
  0x22   : > { %s551_s28 = scalar_lea.vmem %s747_s8, 128  ;;  %s650_s29 = smov [#allocation2]  }
  0x23   : > { %p552_p3 = scmp.ne.s32.totalorder %s747_s8, %s551_s28  ;;  %s556_s30 = sshll.u32 %s650_s29, 4  ;;  %s557_s30 = int_to_ptr.vmem [resolvable:$false] %s556_s30 }
  0x24   : > { %s558_s4 = scalar_lea.vmem %s557_s30, 256  ;;  %p559_p9 = scmp.lt.s32.totalorder %s747_s8, %s557_s30 }
  0x25   : > { %p554_p6 = pnand %p552_p3, %p538_p5  ;;  %p560_p4 = scmp.lt.s32.totalorder %s558_s4, %s551_s28 }
  0x27   : > { %p555_p11 = pneg %p554_p6  ;;  %p561_p10 = por %p560_p4, %p559_p9 }
  0x29   : > { %p562_p12 = pnand %p561_p10, %p555_p11 }
  0x2b   : > { %565 = shalt.err (!%p562_p12)
}
  0x2c   : > { %465 = dma.hbm_to_vmem [thread:$0]  (!%p751_p0), %s745_s6, 128, %s747_s8, %s154_s10  }
  0x2d   : > { %p868_p1 = scmp.lt.s32.totalorder %s648_s17, 3  ;;  %p869_p2 = scmp.ge.s32.totalorder %s648_s17, 1 }
  0x2f   : > { %p173_p5 = pnand %p869_p2, %p868_p1 }
  0x30   : > { %s787_s5 = sand.u32 (!%p173_p5), 1, %s632_s13  }
  0x31   : > { %176 = sbr.rel (%p173_p5) target bundleno = 243 (0xf3), region = 32  ;;  %s447_s7 = sshll.u32 (!%p173_p5), %s787_s5, 3 }
  0x32   : > { %s179_s11 = scalar_lea.sflag (!%p173_p5), [#allocation3], %s787_s5  ;;  %s182_s9 = scalar_lea.vmem (!%p173_p5), [#allocation2], %s447_s7 }
  0x38   : > { %619 = dma.done.wait (%p723_p8), %s179_s11, 128  }
  0x39   : > { %621 = vsyncadd (%p723_p8), %s179_s11, 4294967168  ;;  %v651_v0 = vmov 0   ;;  %v652_v1 = vmov 1   ;;  %v209_v2 = vld [vmem:[%s859_s1] sm:$0xf]  ;;  %v653_v4 = vmov 2   ;;  %v216_v6 = vlaneseq }
  0x3a   : > { %524 = vset.pattern.permute.xlu0 %v651_v0  ;;  %525 = vset.pattern.permute.xlu1 %v652_v1  ;;  %v207_v3 = vld [vmem:[%s860_s2] sm:$0xf]  ;;  %v654_v5 = vmov 3   ;;  %s457_s24 = sshll.u32 %s640_s15, 7  ;;  %s204_s19 = scalar_lea.vmem [#allocation5], %s447_s7 }
  0x3b   : > { %212 = vperm.xlu0 %524, %v209_v2   ;;  %244 = vperm.xlu1 %525, %v209_v2   ;;  %v217_v7 = vshrl.u32 %v216_v6, 7  ;;  %v208_v10 = vld [vmem:[%s182_s9] sm:$0xff]  ;;  %s355_s21 = sshll.u32 %s204_s19, 4  ;;  %s809_s28 = scalar_lea.hbm %s861_s3, %s457_s24  ;;  %s811_s21 = int_to_ptr.vmem [resolvable:$true] %s355_s21 }
  0x3c   : > { %s339_s29 = scalar_lea.sflag [#allocation4], %s787_s5  ;;  %s566_s30 = scalar_lea.vmem %s811_s21, 128 }
  0x3d   : > { %v218_v8 = vsub.s32 0, %v217_v7  ;;  %v222_v9 = vsub.s32 4, %v217_v7  ;;  %v249_v11 = vsub.s32 1, %v217_v7  ;;  %v253_v12 = vsub.s32 5, %v217_v7  ;;  %p567_p8 = scmp.ne.s32.totalorder %s811_s21, %s566_s30  ;;  %p870_p9 = scmp.ne.s32.totalorder %s865_s25, 0 }
  0x3e   : > { %v275_v13 = vsub.s32 2, %v217_v7  ;;  %v279_v14 = vsub.s32 6, %v217_v7  ;;  %v301_v21 = vsub.s32 3, %v217_v7  ;;  %v305_v22 = vsub.s32 7, %v217_v7  ;;  %s655_s15 = smov [#allocation5]  }
  0x3f   : > { %238 = vperm.xlu0 %524, %v207_v3   ;;  %526 = vset.pattern.permute.xlu1 %v653_v4  ;;  %v219_v15 = vrot.slane %v208_v10, %v218_v8  ;;  %v223_v16 = vrot.slane %v208_v10, %v222_v9  ;;  %v250_v17 = vrot.slane %v208_v10, %v249_v11  ;;  %p568_p11 = pnand %p567_p8, %p870_p9  ;;  %s570_s4 = sshll.u32 %s655_s15, 4  ;;  %s571_s4 = int_to_ptr.vmem [resolvable:$false] %s570_s4 }
  0x40   : > { %270 = vperm.xlu1 %526, %v209_v2   ;;  %v254_v18 = vrot.slane %v208_v10, %v253_v12  ;;  %v276_v19 = vrot.slane %v208_v10, %v275_v13  ;;  %v280_v20 = vrot.slane %v208_v10, %v279_v14  ;;  %v302_v31 = vrot.slane %v208_v10, %v301_v21  ;;  %s572_s7 = scalar_lea.vmem %s571_s4, 256  ;;  %p573_p7 = scmp.lt.s32.totalorder %s811_s21, %s571_s4 }
  0x41   : > { %v229_v23 = vrot.slane %v219_v15, %v218_v8  ;;  %v233_v24 = vrot.slane %v223_v16, %v218_v8  ;;  %v260_v27 = vrot.slane %v250_v17, %v249_v11  ;;  %v306_v32 = vrot.slane %v208_v10, %v305_v22  ;;  %p569_p0 = pneg %p568_p11  ;;  %p574_p13 = scmp.lt.s32.totalorder %s572_s7, %s566_s30 }
  0x42   : > { %v264_v28 = vrot.slane %v254_v18, %v249_v11  ;;  %v286_v29 = vrot.slane %v276_v19, %v275_v13  ;;  %v290_v30 = vrot.slane %v280_v20, %v275_v13  ;;  %v312_v43 = vrot.slane %v302_v31, %v301_v21 }
  0x43   : > { %527 = vset.pattern.permute.xlu0 %v654_v5  ;;  %v316_v44 = vrot.slane %v306_v32, %v301_v21  ;;  %p575_p3 = por %p574_p13, %p573_p7 }
  0x44   : > { %296 = vperm.xlu0 %527, %v209_v2  }
  0x45   : > { %p576_p6 = pnand %p575_p3, %p569_p0 }
  0xba   : > { %v213_v25 = vpop.permute.xlu0 %212  ;;  %v245_v26 = vpop.permute.xlu1 %244 }
  0xbb   : > { %v234_v33 = vmul.f32 %v229_v23, %v213_v25  ;;  %v235_v34 = vmul.f32 %v233_v24, %v213_v25  ;;  %v265_v36 = vmul.f32 %v260_v27, %v245_v26  ;;  %v266_v37 = vmul.f32 %v264_v28, %v245_v26 }
  0xbe   : > { %v239_v35 = vpop.permute.xlu0 %238 }
  0xbf   : > { %v241_v38 = vadd.f32 %v239_v35, %v234_v33  ;;  %v242_v39 = vadd.f32 %v239_v35, %v235_v34  ;;  %v271_v40 = vpop.permute.xlu1 %270 }
  0xc0   : > { %v291_v41 = vmul.f32 %v286_v29, %v271_v40  ;;  %v292_v42 = vmul.f32 %v290_v30, %v271_v40 }
  0xc1   : > { %v267_v45 = vadd.f32 %v265_v36, %v241_v38  ;;  %v268_v46 = vadd.f32 %v266_v37, %v242_v39 }
  0xc3   : > { %v293_v47 = vadd.f32 %v291_v41, %v267_v45  ;;  %v294_v48 = vadd.f32 %v292_v42, %v268_v46  ;;  %v297_v49 = vpop.permute.xlu0 %296 }
  0xc4   : > { %v317_v50 = vmul.f32 %v312_v43, %v297_v49  ;;  %v318_v51 = vmul.f32 %v316_v44, %v297_v49 }
  0xc6   : > { %v319_v52 = vadd.f32 %v317_v50, %v293_v47  ;;  %v320_v53 = vadd.f32 %v318_v51, %v294_v48 }
  0xc8   : > { %v449_v54 = vmul.f32 -1.442695, %v319_v52  ;;  %v450_v55 = vmul.f32 -1.442695, %v320_v53 }
  0xca   : > { %528 = vpow2.f32 %v449_v54 }
  0xcb   : > { %530 = vpow2.f32 %v450_v55 }
  0xd4   : > { %v529_v56 = vpop.eup %528 }
  0xd5   : > { %v531_v57 = vpop.eup %530  ;;  %v327_v58 = vadd.f32 1.0, %v529_v56 }
  0xd6   : > { %v328_v59 = vadd.f32 1.0, %v531_v57 }
  0xd7   : > { %532 = vrcp.f32 %v327_v58 }
  0xd8   : > { %534 = vrcp.f32 %v328_v59 }
  0xe1   : > { %v533_v60 = vpop.eup %532 }
  0xe2   : > { %v535_v61 = vpop.eup %534 }
  0xe3   : > { %v335_v62 = vcombine.low %v533_v60, %v535_v61 }
  0xe5   : > { %337 = vst [vmem:[%s204_s19] sm:$0xff] %v335_v62 }
  0xe6   : > { %579 = shalt.err (!%p576_p6)
}
  0xe7   : > { %s580_s5 = scalar_lea.hbm %s809_s28, 128  ;;  %s584_s6 = scalar_lea.hbm %s861_s3, 256 }
  0xe8   : > { %p581_p4 = scmp.ne.s32.totalorder %s809_s28, %s580_s5  ;;  %p585_p1 = scmp.lt.u32.totalorder %s809_s28, %s861_s3 }
  0xe9   : > { %p586_p2 = scmp.lt.u32.totalorder %s584_s6, %s580_s5  ;;  %p588_p8 = scmp.lt.u32.totalorder %s580_s5, %s809_s28 }
  0xea   : > { %p582_p10 = pnand %p581_p4, %p870_p9 }
  0xeb   : > { %p587_p5 = por %p586_p2, %p585_p1 }
  0xec   : > { %p583_p12 = pneg %p582_p10 }
  0xed   : > { %p589_p11 = por %p588_p8, %p587_p5 }
  0xef   : > { %p590_p0 = pnand %p589_p11, %p583_p12 }
  0xf1   : > { %593 = shalt.err (!%p590_p0)
}
  0xf2   : > { %460 = dma.vmem_to_hbm [thread:$0]  (%p870_p9), %s811_s21, 128, %s809_s28, %s339_s29  }
  0xf3 PF: > { %s367_s18 = sand.u32 1, %s628_s12   ;;  %p871_p7 = scmp.ne.s32.totalorder %s866_s27, 0 }
  0xf4   : > { %p872_p13 = scmp.ge.s32.totalorder %s648_s17, 2  ;;  %s368_s24 = scalar_lea.sflag [#allocation4], %s367_s18 }
  0xf6   : > { %p467_p3 = pnand %p872_p13, %p871_p7 }
  0xf8   : > { %623 = dma.done.wait (!%p467_p3), %s368_s24, 128  }
  0xf9   : > { %625 = vsyncadd (!%p467_p3), %s368_s24, 4294967168  ;;  %s19_s17 = sadd.s32 1, %s648_s17   ;;  %s873_s12 = smov %s632_s13 }
  0xfa   : > { %p16_p6 = scmp.ge.s32.totalorder %s19_s17, 4   ;;  %s874_s13 = smov %s636_s14 }
  0xfb   : > { %s875_s14 = smov %s732_s26  ;;  %s876_s15 = smov %s644_s16 }
  0xfc   : > { %s877_s16 = smov %s879_s20  ;;  %18 = sbr.rel (!%p16_p6) target bundleno = 6 (0x6), region = 77 }
 0x103   :  { %373 = vsyncpa [#allocation3], 1 }
 0x104   :  { %375 = vsyncpa [#allocation3 + $0x1], 1 }
 0x105   :  { %376 = vsyncpa [#allocation4], 1 }
 0x106   :  { %378 = vsyncpa [#allocation4 + $0x1], 1 }

</bundles_post_ra>
